<compile_context>
chip_gen: v5e
topology: v5e:2x2
jax: 0.10.0
libtpu: 0.0.40
codegen_flags: <defaults>
</compile_context>

<pallas_src>
import jax
import jax.numpy as jnp
from jax import lax
from jax.experimental import pallas as pl
from jax.experimental.pallas import tpu as pltpu


def _crf_kernel(maxlen_ref,      # SMEM (nb,) int32 : longest valid length per batch tile (scalar prefetch)
                logits_ref,      # (ts, T, tb) f32  : emission scores, batch on lanes
                tags_ref,        # (ts, 1, tb) i32  : gold tags, -1 where masked
                transT_ref,      # (T, T)  f32      : transitions.T            (to, from)
                exp_transT_ref,  # (T, T)  f32      : exp(transitions.T - c)   (to, from)
                coff_ref,        # (1, 1)  f32      : c = max(transitions)
                start_ref,       # (T, 1)  f32      : start transitions
                end_ref,         # (T, 1)  f32      : end transitions
                out_ref,         # (1, tb) f32      : per-sequence log-likelihood (minus host start term)
                alpha_sc,        # VMEM (T, tb) f32 : forward log-alpha carry
                score_sc,        # VMEM (T, tb) f32 : per-tag gold-path accumulator
                prev_sc,         # VMEM (1, tb) i32 : tag at the last step of the previous chunk
                last_sc):        # VMEM (1, tb) i32 : last valid tag seen so far
    ts, T, tb = logits_ref.shape
    b = pl.program_id(0)                  # batch tile ("parallel")
    s = pl.program_id(1)                  # time tile  ("arbitrary", last)
    ns = pl.num_programs(1)

    tag_iota = lax.broadcasted_iota(jnp.int32, (T, tb), 0)   # hoisted (not CSE'd by JAX)

    @pl.when(s == 0)
    def _init():
        # alpha_sc needs no init: the peeled first step overwrites it under is_first.
        score_sc[...] = jnp.zeros(score_sc.shape, jnp.float32)
        prev_sc[...] = jnp.full(prev_sc.shape, -1, jnp.int32)   # -1 -> zero one-hot -> no transition into step 0
        last_sc[...] = jnp.full(last_sc.shape, -1, jnp.int32)

    # Skip time tiles that lie entirely past the longest sequence of this batch tile.
    @pl.when(s * ts < maxlen_ref[b])
    def _compute():
        transT = transT_ref[...]          # (T_to, T_from)
        exp_transT = exp_transT_ref[...]  # exp(trans - c), transposed
        c_off = coff_ref[...]             # (1, 1)
        start = start_ref[...]            # (T, 1)

        def make_step(handle_first):
            def step(i, carry):
                alpha, score_vec, oh_prev, last_tag = carry
                emit = logits_ref[i]                                   # (T, tb)
                tag_i = tags_ref[i]                                    # (1, tb) int32, -1 == masked
                valid = tag_i >= 0                                     # (1, tb) == mask[i]
                oh_cur = (tag_i == tag_iota).astype(jnp.float32)       # (T, tb)

                # ---- denominator: alpha' = logsumexp_from(alpha + trans) + emit ----
                # exp-matmul form: lse = log(exp(trans - c)^T @ exp(alpha - m)) + m + c   (MXU)
                m = jnp.max(alpha, axis=0, keepdims=True)              # (1, tb)
                ealpha = jnp.exp(alpha - m)                            # (T, tb)  — T exps / lane
                sumexp = jnp.dot(exp_transT, ealpha,
                                 preferred_element_type=jnp.float32)   # (T, tb)  — MXU
                lse = jnp.log(sumexp) + m + c_off                      # (T, tb)
                if handle_first:                                       # only the peeled chunk step
                    is_first = s == 0                                  # global step 0
                    cand = jnp.where(is_first, start, lse) + emit
                    upd = jnp.logical_or(is_first, valid)
                else:                                                  # hot loop: no selects for step 0
                    cand = lse + emit
                    upd = valid
                alpha_new = jnp.where(upd, cand, alpha)

                # ---- numerator: transitions[prev, cur] + emissions[cur], per-tag accumulated ----
                trans_sel = jnp.dot(transT, oh_prev,
                                    preferred_element_type=jnp.float32)  # (T, tb) — MXU
                score_new = score_vec + (trans_sel + emit) * oh_cur       # oh_cur == 0 on masked steps
                last_new = jnp.where(valid, tag_i, last_tag)              # (1, tb) int32
                return alpha_new, score_new, oh_cur, last_new
            return step

        oh_prev0 = (prev_sc[...] == tag_iota).astype(jnp.float32)
        carry = (alpha_sc[...], score_sc[...], oh_prev0, last_sc[...])
        # Peel chunk index 0 so the hot loop carries no "first global step" handling.
        carry = make_step(True)(0, carry)
        carry = lax.fori_loop(1, ts, make_step(False), carry,
                              unroll=min(8, max(ts - 1, 1)))
        alpha, score_vec, _, last_tag = carry
        alpha_sc[...] = alpha
        score_sc[...] = score_vec
        prev_sc[...] = tags_ref[ts - 1]
        last_sc[...] = last_tag

    @pl.when(s == ns - 1)
    def _finalize():
        end = end_ref[...]                                                  # (T, 1)
        stops = alpha_sc[...] + end
        ms = jnp.max(stops, axis=0, keepdims=True)
        log_denom = jnp.log(jnp.sum(jnp.exp(stops - ms), axis=0, keepdims=True)) + ms
        oh_last = (last_sc[...] == tag_iota).astype(jnp.float32)
        end_sc = jnp.sum(oh_last * end, axis=0, keepdims=True)              # end_transitions[last_tag]
        num = jnp.sum(score_sc[...], axis=0, keepdims=True)                 # single tag-axis reduce
        out_ref[...] = num + end_sc - log_denom


def crf_forward(logits, tags, mask, transitions, start_transitions, end_transitions,
                *, ts=128, lane_tile=128, vmem_input_budget=8 * 1024 * 1024):
    """Equivalent of ConditionalRandomField.forward (include_start_end_transitions=True).

    logits: (B, S, T) float, tags: (B, S) int (-100 = ignored), mask: (B, S).
    Returns a scalar float32: sum over batch of per-sequence log-likelihoods.
    """
    B, S, T = logits.shape

    # forward() prologue: mask[tags == -100] = 0 ; tags[tags == -100] = label2id[id2label[0]] (== 0)
    mask_eff = jnp.where(tags == -100, False, mask.astype(bool))
    tags_c = jnp.where(tags == -100, 0, tags).astype(jnp.int32)

    # start_transitions[tags[0]] is added unconditionally by the reference; this tiny O(B)
    # gather is done on the host so the kernel's single tag stream can fold the mask in.
    start_num = start_transitions.astype(jnp.float32)[tags_c[:, 0]]          # (B,)

    tags_enc = jnp.where(mask_eff, tags_c, -1)                               # (B, S), -1 == masked
    seq_len = jnp.sum(mask_eff, axis=1).astype(jnp.int32)                    # (B,)

    # Lane-dense layout: batch on the 128-wide lane axis.
    logits_t = jnp.transpose(logits, (1, 2, 0)).astype(jnp.float32)          # (S, T, B)
    tags_t = jnp.transpose(tags_enc, (1, 0))[:, None, :]                     # (S, 1, B)

    # ---- tiling ----
    tb = lane_tile                                                           # 128 lanes per batch tile
    Bp = pl.cdiv(B, tb) * tb
    # Time chunk: big enough to amortize the ~600-cycle grid-step overhead, but the
    # double-buffered (logits + tags) working set stays within budget on every TPU
    # generation (v7x scoped default 32 MiB of 64 MiB; v5e 16 MiB of 128 MiB).
    ts_fit = max(8, vmem_input_budget // (2 * tb * 4 * (T + 1)))
    ts = max(1, min(ts, S, ts_fit))
    Sp = pl.cdiv(S, ts) * ts

    if Sp != S:
        pad = Sp - S
        logits_t = jnp.pad(logits_t, ((0, pad), (0, 0), (0, 0)))
        tags_t = jnp.pad(tags_t, ((0, pad), (0, 0), (0, 0)), constant_values=-1)
    if Bp != B:
        padb = Bp - B
        logits_t = jnp.pad(logits_t, ((0, 0), (0, 0), (0, padb)))
        tags_t = jnp.pad(tags_t, ((0, 0), (0, 0), (0, padb)), constant_values=-1)
        seq_len = jnp.pad(seq_len, (0, padb))

    nb, ns = Bp // tb, Sp // ts
    # Per-batch-tile longest sequence (>= 1 so the s == 0 tile always seeds the recursion).
    maxlen = jnp.maximum(jnp.max(seq_len.reshape(nb, tb), axis=1), 1).astype(jnp.int32)

    trans = transitions.astype(jnp.float32)
    transT = jnp.transpose(trans)                          # (to, from) for the one-hot matmuls
    c = jnp.max(trans)
    exp_transT = jnp.exp(transT - c)                       # stable exp-matmul factor
    coff = jnp.reshape(c, (1, 1))
    start = jnp.reshape(start_transitions.astype(jnp.float32), (T, 1))
    end = jnp.reshape(end_transitions.astype(jnp.float32), (T, 1))

    per_seq = pl.pallas_call(
        _crf_kernel,
        out_shape=jax.ShapeDtypeStruct((1, Bp), jnp.float32),
        grid_spec=pltpu.PrefetchScalarGridSpec(
            num_scalar_prefetch=1,
            grid=(nb, ns),                                 # batch tiles (parallel), time tiles (arbitrary, last)
            in_specs=[
                pl.BlockSpec((ts, T, tb), lambda b, s, ml: (s, 0, b)),   # logits chunk
                pl.BlockSpec((ts, 1, tb), lambda b, s, ml: (s, 0, b)),   # tags chunk (mask folded in)
                pl.BlockSpec((T, T), lambda b, s, ml: (0, 0)),           # transitions.T (resident)
                pl.BlockSpec((T, T), lambda b, s, ml: (0, 0)),           # exp(transitions.T - c)
                pl.BlockSpec((1, 1), lambda b, s, ml: (0, 0)),           # c = max(transitions)
                pl.BlockSpec((T, 1), lambda b, s, ml: (0, 0)),           # start transitions
                pl.BlockSpec((T, 1), lambda b, s, ml: (0, 0)),           # end transitions
            ],
            out_specs=pl.BlockSpec((1, tb), lambda b, s, ml: (0, b)),    # lane-dense per-seq output
            scratch_shapes=[
                pltpu.VMEM((T, tb), jnp.float32),   # alpha carry
                pltpu.VMEM((T, tb), jnp.float32),   # per-tag gold-path accumulator
                pltpu.VMEM((1, tb), jnp.int32),     # tag at end of previous chunk
                pltpu.VMEM((1, tb), jnp.int32),     # last valid tag
            ],
        ),
        compiler_params=pltpu.CompilerParams(
            dimension_semantics=("parallel", "arbitrary")),
    )(maxlen, logits_t, tags_t, transT, exp_transT, coff, start, end)

    return jnp.sum(per_seq[0, :B] + start_num)


# ---------------- pure-JAX reference (mirrors the PyTorch module) ----------------
def _ref_crf(logits, tags, mask, transitions, start_t, end_t):
    B, S, T = logits.shape
    mask2 = jnp.where(tags == -100, False, mask.astype(bool))
    tags2 = jnp.where(tags == -100, 0, tags)
    logits_t = jnp.transpose(logits, (1, 0, 2))
    mask_t = jnp.transpose(mask2, (1, 0)).astype(jnp.float32)
    tags_t = jnp.transpose(tags2, (1, 0))

    # denominator
    alpha = start_t[None, :] + logits_t[0]
    for i in range(1, S):
        inner = alpha[:, :, None] + logits_t[i][:, None, :] + transitions[None]
        lse = jax.scipy.special.logsumexp(inner, axis=1)
        alpha = lse * mask_t[i][:, None] + alpha * (1.0 - mask_t[i][:, None])
    stops = alpha + end_t[None, :]
    log_denom = jax.scipy.special.logsumexp(stops, axis=-1)

    # numerator
    score = start_t[tags_t[0]]
    for i in range(S - 1):
        cur, nxt = tags_t[i], tags_t[i + 1]
        trans_sc = transitions[cur, nxt]
        emit_sc = jnp.take_along_axis(logits_t[i], cur[:, None], axis=1)[:, 0]
        score = score + trans_sc * mask_t[i + 1] + emit_sc * mask_t[i]
    last_idx = jnp.sum(mask_t, axis=0).astype(jnp.int32) - 1
    last_tags = tags_t[last_idx, jnp.arange(B)]
    last_trans = end_t[last_tags]
    last_inp = jnp.take_along_axis(logits_t[-1], last_tags[:, None], axis=1)[:, 0]
    score = score + last_trans + last_inp * mask_t[-1]
    return jnp.sum(score - log_denom)


if __name__ == "__main__":
    B, S, T = 2, 8, 5  # batch, seq_len, num_tags

    key = jax.random.PRNGKey(0)
    k1, k2, k3, k4, k5 = jax.random.split(key, 5)

    # Deterministic parameter init (mirrors reset_parameters):
    #   transitions ~ xavier_normal (std = sqrt(2/(T+T))), start/end ~ normal(0,1)
    transitions = jax.random.normal(k2, (T, T), jnp.float32) * jnp.sqrt(2.0 / (T + T))
    start_transitions = jax.random.normal(k3, (T,), jnp.float32)
    end_transitions = jax.random.normal(k4, (T,), jnp.float32)

    # Example inputs (emission scores from an upstream tagger), tags with HF-style -100 padding.
    logits = jax.random.normal(k1, (B, S, T), jnp.float32)
    tags = jax.random.randint(k5, (B, S), 0, T, jnp.int32)
    tags = tags.at[1, 6:].set(-100)            # last two positions of batch 1 are padding
    mask = jnp.ones((B, S), jnp.int32)

    out = crf_forward(logits, tags, mask, transitions, start_transitions, end_transitions)
    out = jax.block_until_ready(out)

    ref = _ref_crf(logits, tags, mask, transitions, start_transitions, end_transitions)
    assert jnp.allclose(out, ref, atol=1e-3, rtol=1e-4), (float(out), float(ref))

    print("KERNEL_OK")
</pallas_src>

<mosaic_0001>
module attributes {stable_mosaic.version = 11 : i64} {
  func.func @_crf_kernel(%arg0: i32, %arg1: i32, %arg2: memref<1xi32, #tpu.memory_space<smem>>, %arg3: memref<8x5x128xf32, #tpu.memory_space<vmem>>, %arg4: memref<8x1x128xi32, #tpu.memory_space<vmem>>, %arg5: memref<5x5xf32, #tpu.memory_space<vmem>>, %arg6: memref<5x5xf32, #tpu.memory_space<vmem>>, %arg7: memref<1x1xf32, #tpu.memory_space<vmem>>, %arg8: memref<5x1xf32, #tpu.memory_space<vmem>>, %arg9: memref<5x1xf32, #tpu.memory_space<vmem>>, %arg10: memref<1x128xf32, #tpu.memory_space<vmem>>, %arg11: memref<5x128xf32, #tpu.memory_space<vmem>>, %arg12: memref<5x128xf32, #tpu.memory_space<vmem>>, %arg13: memref<1x128xi32, #tpu.memory_space<vmem>>, %arg14: memref<1x128xi32, #tpu.memory_space<vmem>>) attributes {dimension_semantics = [#tpu.dimension_semantics<parallel>, #tpu.dimension_semantics<arbitrary>], iteration_bounds = array<i64: 1, 1>, scalar_prefetch = 1 : i64, scratch_operands = 4 : i64, tpu.core_type = #tpu.core_type<tc>, window_params = [{transform_indices = @transform_0, window_bounds = array<i64: 8, 5, 128>}, {transform_indices = @transform_1, window_bounds = array<i64: 8, 1, 128>}, {pipeline_mode = #tpu.pipeline_mode<synchronous>, transform_indices = @transform_2, window_bounds = array<i64: 5, 5>}, {pipeline_mode = #tpu.pipeline_mode<synchronous>, transform_indices = @transform_3, window_bounds = array<i64: 5, 5>}, {pipeline_mode = #tpu.pipeline_mode<synchronous>, transform_indices = @transform_4, window_bounds = array<i64: 1, 1>}, {pipeline_mode = #tpu.pipeline_mode<synchronous>, transform_indices = @transform_5, window_bounds = array<i64: 5, 1>}, {pipeline_mode = #tpu.pipeline_mode<synchronous>, transform_indices = @transform_6, window_bounds = array<i64: 5, 1>}, {transform_indices = @transform_7, window_bounds = array<i64: 1, 128>}]} {
    %0 = tpu.iota {dimensions = array<i32: 0>} : vector<5x128xi32>
    %c0_i32 = arith.constant 0 : i32
    %1 = arith.cmpi eq, %arg1, %c0_i32 : i32
    %2 = arith.extui %1 : i1 to i32
    %c0_i32_0 = arith.constant 0 : i32
    %3 = arith.cmpi ne, %2, %c0_i32_0 : i32
    scf.if %3 {
      %cst = arith.constant 0.000000e+00 : f32
      %13 = vector.broadcast %cst : f32 to vector<5x128xf32>
      %c0 = arith.constant 0 : index
      %c0_4 = arith.constant 0 : index
      %14 = vector.load %arg12[%c0, %c0_4] : memref<5x128xf32, #tpu.memory_space<vmem>>, vector<5x128xf32>
      tpu.vector_store %arg12[%c0, %c0_4], %13 {strides = array<i32>} : memref<5x128xf32, #tpu.memory_space<vmem>>, vector<5x128xf32>,
      %c-1_i32 = arith.constant -1 : i32
      %15 = vector.broadcast %c-1_i32 : i32 to vector<1x128xi32>
      %c0_5 = arith.constant 0 : index
      %c0_6 = arith.constant 0 : index
      %16 = vector.load %arg13[%c0_5, %c0_6] : memref<1x128xi32, #tpu.memory_space<vmem>>, vector<1x128xi32>
      tpu.vector_store %arg13[%c0_5, %c0_6], %15 {strides = array<i32>} : memref<1x128xi32, #tpu.memory_space<vmem>>, vector<1x128xi32>,
      %c-1_i32_7 = arith.constant -1 : i32
      %17 = vector.broadcast %c-1_i32_7 : i32 to vector<1x128xi32>
      %c0_8 = arith.constant 0 : index
      %c0_9 = arith.constant 0 : index
      %18 = vector.load %arg14[%c0_8, %c0_9] : memref<1x128xi32, #tpu.memory_space<vmem>>, vector<1x128xi32>
      tpu.vector_store %arg14[%c0_8, %c0_9], %17 {strides = array<i32>} : memref<1x128xi32, #tpu.memory_space<vmem>>, vector<1x128xi32>,
    } else {
    }
    %c8_i32 = arith.constant 8 : i32
    %4 = arith.muli %arg1, %c8_i32 : i32
    %5 = arith.index_cast %arg0 : i32 to index
    %6 = memref.load %arg2[%5] : memref<1xi32, #tpu.memory_space<smem>>
    %7 = arith.cmpi slt, %4, %6 : i32
    %8 = arith.extui %7 : i1 to i32
    %c0_i32_1 = arith.constant 0 : i32
    %9 = arith.cmpi ne, %8, %c0_i32_1 : i32
    scf.if %9 {
      %c0 = arith.constant 0 : index
      %c0_4 = arith.constant 0 : index
      %13 = vector.load %arg5[%c0, %c0_4] : memref<5x5xf32, #tpu.memory_space<vmem>>, vector<5x5xf32>
      %c0_5 = arith.constant 0 : index
      %c0_6 = arith.constant 0 : index
      %14 = vector.load %arg6[%c0_5, %c0_6] : memref<5x5xf32, #tpu.memory_space<vmem>>, vector<5x5xf32>
      %c0_7 = arith.constant 0 : index
      %c0_8 = arith.constant 0 : index
      %15 = vector.load %arg7[%c0_7, %c0_8] : memref<1x1xf32, #tpu.memory_space<vmem>>, vector<1x1xf32>
      %c0_9 = arith.constant 0 : index
      %c0_10 = arith.constant 0 : index
      %16 = vector.load %arg8[%c0_9, %c0_10] : memref<5x1xf32, #tpu.memory_space<vmem>>, vector<5x1xf32>
      %c0_11 = arith.constant 0 : index
      %c0_12 = arith.constant 0 : index
      %17 = vector.load %arg13[%c0_11, %c0_12] : memref<1x128xi32, #tpu.memory_space<vmem>>, vector<1x128xi32>
      %18 = vector.broadcast %17 : vector<1x128xi32> to vector<5x128xi32>
      %19 = arith.cmpi eq, %18, %0 : vector<5x128xi32>
      %20 = arith.extui %19 : vector<5x128xi1> to vector<5x128xi32>
      %21 = arith.sitofp %20 : vector<5x128xi32> to vector<5x128xf32>
      %c0_13 = arith.constant 0 : index
      %c0_14 = arith.constant 0 : index
      %22 = vector.load %arg11[%c0_13, %c0_14] : memref<5x128xf32, #tpu.memory_space<vmem>>, vector<5x128xf32>
      %c0_15 = arith.constant 0 : index
      %c0_16 = arith.constant 0 : index
      %23 = vector.load %arg12[%c0_15, %c0_16] : memref<5x128xf32, #tpu.memory_space<vmem>>, vector<5x128xf32>
      %c0_17 = arith.constant 0 : index
      %c0_18 = arith.constant 0 : index
      %24 = vector.load %arg14[%c0_17, %c0_18] : memref<1x128xi32, #tpu.memory_space<vmem>>, vector<1x128xi32>
      %c0_19 = arith.constant 0 : index
      %c0_20 = arith.constant 0 : index
      %c0_21 = arith.constant 0 : index
      %25 = vector.load %arg3[%c0_19, %c0_20, %c0_21] : memref<8x5x128xf32, #tpu.memory_space<vmem>>, vector<1x5x128xf32>
      %26 = vector.shape_cast %25 : vector<1x5x128xf32> to vector<5x128xf32>
      %c0_22 = arith.constant 0 : index
      %c0_23 = arith.constant 0 : index
      %c0_24 = arith.constant 0 : index
      %27 = vector.load %arg4[%c0_22, %c0_23, %c0_24] : memref<8x1x128xi32, #tpu.memory_space<vmem>>, vector<1x1x128xi32>
      %28 = vector.shape_cast %27 : vector<1x1x128xi32> to vector<1x128xi32>
      %c0_i32_25 = arith.constant 0 : i32
      %29 = vector.broadcast %c0_i32_25 : i32 to vector<1x128xi32>
      %30 = arith.cmpi sge, %28, %29 : vector<1x128xi32>
      %31 = vector.broadcast %28 : vector<1x128xi32> to vector<5x128xi32>
      %32 = arith.cmpi eq, %31, %0 : vector<5x128xi32>
      %33 = arith.extui %32 : vector<5x128xi1> to vector<5x128xi32>
      %34 = arith.sitofp %33 : vector<5x128xi32> to vector<5x128xf32>
      %cst = arith.constant dense<0xFF800000> : vector<128xf32>
      %35 = vector.multi_reduction <maximumf>, %22, %cst [0] : vector<5x128xf32> to vector<128xf32>
      %36 = vector.shape_cast %35 : vector<128xf32> to vector<1x128xf32>
      %37 = vector.broadcast %36 : vector<1x128xf32> to vector<5x128xf32>
      %38 = arith.subf %22, %37 : vector<5x128xf32>
      %39 = math.exp %38 : vector<5x128xf32>
      %cst_26 = arith.constant dense<0.000000e+00> : vector<5x128xf32>
      %40 = tpu.matmul %14, %39, %cst_26 {dimension_numbers = #tpu.dot_dimension_numbers<[1], [0], [0], [1], [0, 0, 1, 1], [], []>} : vector<5x5xf32>, vector<5x128xf32>, vector<5x128xf32> -> vector<5x128xf32>
      %41 = math.log %40 : vector<5x128xf32>
      %42 = vector.broadcast %36 : vector<1x128xf32> to vector<5x128xf32>
      %43 = arith.addf %41, %42 : vector<5x128xf32>
      %44 = vector.broadcast %15 : vector<1x1xf32> to vector<5x128xf32>
      %45 = arith.addf %43, %44 : vector<5x128xf32>
      %c0_i32_27 = arith.constant 0 : i32
      %46 = arith.cmpi eq, %arg1, %c0_i32_27 : i32
      %47 = vector.shape_cast %16 : vector<5x1xf32> to vector<5x1xf32>
      %48 = vector.broadcast %47 : vector<5x1xf32> to vector<5x128xf32>
      %49 = arith.select %46, %48, %45 : vector<5x128xf32>
      %50 = arith.addf %49, %26 : vector<5x128xf32>
      %51 = vector.broadcast %46 : i1 to vector<1x128xi1>
      %52 = arith.ori %51, %30 : vector<1x128xi1>
      %53 = vector.shape_cast %52 : vector<1x128xi1> to vector<1x128xi1>
      %54 = vector.broadcast %53 : vector<1x128xi1> to vector<5x128xi1>
      %55 = arith.select %54, %50, %22 : vector<5x128xi1>, vector<5x128xf32>
      %cst_28 = arith.constant dense<0.000000e+00> : vector<5x128xf32>
      %56 = tpu.matmul %13, %21, %cst_28 {dimension_numbers = #tpu.dot_dimension_numbers<[1], [0], [0], [1], [0, 0, 1, 1], [], []>} : vector<5x5xf32>, vector<5x128xf32>, vector<5x128xf32> -> vector<5x128xf32>
      %57 = arith.addf %56, %26 : vector<5x128xf32>
      %58 = arith.mulf %57, %34 : vector<5x128xf32>
      %59 = arith.addf %23, %58 : vector<5x128xf32>
      %60 = arith.select %30, %28, %24 : vector<1x128xi1>, vector<1x128xi32>
      %c1_i32 = arith.constant 1 : i32
      %61 = arith.index_cast %c1_i32 : i32 to index
      %c0_29 = arith.constant 0 : index
      %c0_30 = arith.constant 0 : index
      %62 = vector.load %arg3[%61, %c0_29, %c0_30] : memref<8x5x128xf32, #tpu.memory_space<vmem>>, vector<1x5x128xf32>
      %63 = vector.shape_cast %62 : vector<1x5x128xf32> to vector<5x128xf32>
      %64 = arith.index_cast %c1_i32 : i32 to index
      %c0_31 = arith.constant 0 : index
      %c0_32 = arith.constant 0 : index
      %65 = vector.load %arg4[%64, %c0_31, %c0_32] : memref<8x1x128xi32, #tpu.memory_space<vmem>>, vector<1x1x128xi32>
      %66 = vector.shape_cast %65 : vector<1x1x128xi32> to vector<1x128xi32>
      %c0_i32_33 = arith.constant 0 : i32
      %67 = vector.broadcast %c0_i32_33 : i32 to vector<1x128xi32>
      %68 = arith.cmpi sge, %66, %67 : vector<1x128xi32>
      %69 = vector.broadcast %66 : vector<1x128xi32> to vector<5x128xi32>
      %70 = arith.cmpi eq, %69, %0 : vector<5x128xi32>
      %71 = arith.extui %70 : vector<5x128xi1> to vector<5x128xi32>
      %72 = arith.sitofp %71 : vector<5x128xi32> to vector<5x128xf32>
      %cst_34 = arith.constant dense<0xFF800000> : vector<128xf32>
      %73 = vector.multi_reduction <maximumf>, %55, %cst_34 [0] : vector<5x128xf32> to vector<128xf32>
      %74 = vector.shape_cast %73 : vector<128xf32> to vector<1x128xf32>
      %75 = vector.broadcast %74 : vector<1x128xf32> to vector<5x128xf32>
      %76 = arith.subf %55, %75 : vector<5x128xf32>
      %77 = math.exp %76 : vector<5x128xf32>
      %cst_35 = arith.constant dense<0.000000e+00> : vector<5x128xf32>
      %78 = tpu.matmul %14, %77, %cst_35 {dimension_numbers = #tpu.dot_dimension_numbers<[1], [0], [0], [1], [0, 0, 1, 1], [], []>} : vector<5x5xf32>, vector<5x128xf32>, vector<5x128xf32> -> vector<5x128xf32>
      %79 = math.log %78 : vector<5x128xf32>
      %80 = vector.broadcast %74 : vector<1x128xf32> to vector<5x128xf32>
      %81 = arith.addf %79, %80 : vector<5x128xf32>
      %82 = vector.broadcast %15 : vector<1x1xf32> to vector<5x128xf32>
      %83 = arith.addf %81, %82 : vector<5x128xf32>
      %84 = arith.addf %83, %63 : vector<5x128xf32>
      %85 = vector.shape_cast %68 : vector<1x128xi1> to vector<1x128xi1>
      %86 = vector.broadcast %85 : vector<1x128xi1> to vector<5x128xi1>
      %87 = arith.select %86, %84, %55 : vector<5x128xi1>, vector<5x128xf32>
      %cst_36 = arith.constant dense<0.000000e+00> : vector<5x128xf32>
      %88 = tpu.matmul %13, %34, %cst_36 {dimension_numbers = #tpu.dot_dimension_numbers<[1], [0], [0], [1], [0, 0, 1, 1], [], []>} : vector<5x5xf32>, vector<5x128xf32>, vector<5x128xf32> -> vector<5x128xf32>
      %89 = arith.addf %88, %63 : vector<5x128xf32>
      %90 = arith.mulf %89, %72 : vector<5x128xf32>
      %91 = arith.addf %59, %90 : vector<5x128xf32>
      %92 = arith.select %68, %66, %60 : vector<1x128xi1>, vector<1x128xi32>
      %c2_i32 = arith.constant 2 : i32
      %93 = arith.index_cast %c2_i32 : i32 to index
      %c0_37 = arith.constant 0 : index
      %c0_38 = arith.constant 0 : index
      %94 = vector.load %arg3[%93, %c0_37, %c0_38] : memref<8x5x128xf32, #tpu.memory_space<vmem>>, vector<1x5x128xf32>
      %95 = vector.shape_cast %94 : vector<1x5x128xf32> to vector<5x128xf32>
      %96 = arith.index_cast %c2_i32 : i32 to index
      %c0_39 = arith.constant 0 : index
      %c0_40 = arith.constant 0 : index
      %97 = vector.load %arg4[%96, %c0_39, %c0_40] : memref<8x1x128xi32, #tpu.memory_space<vmem>>, vector<1x1x128xi32>
      %98 = vector.shape_cast %97 : vector<1x1x128xi32> to vector<1x128xi32>
      %c0_i32_41 = arith.constant 0 : i32
      %99 = vector.broadcast %c0_i32_41 : i32 to vector<1x128xi32>
      %100 = arith.cmpi sge, %98, %99 : vector<1x128xi32>
      %101 = vector.broadcast %98 : vector<1x128xi32> to vector<5x128xi32>
      %102 = arith.cmpi eq, %101, %0 : vector<5x128xi32>
      %103 = arith.extui %102 : vector<5x128xi1> to vector<5x128xi32>
      %104 = arith.sitofp %103 : vector<5x128xi32> to vector<5x128xf32>
      %cst_42 = arith.constant dense<0xFF800000> : vector<128xf32>
      %105 = vector.multi_reduction <maximumf>, %87, %cst_42 [0] : vector<5x128xf32> to vector<128xf32>
      %106 = vector.shape_cast %105 : vector<128xf32> to vector<1x128xf32>
      %107 = vector.broadcast %106 : vector<1x128xf32> to vector<5x128xf32>
      %108 = arith.subf %87, %107 : vector<5x128xf32>
      %109 = math.exp %108 : vector<5x128xf32>
      %cst_43 = arith.constant dense<0.000000e+00> : vector<5x128xf32>
      %110 = tpu.matmul %14, %109, %cst_43 {dimension_numbers = #tpu.dot_dimension_numbers<[1], [0], [0], [1], [0, 0, 1, 1], [], []>} : vector<5x5xf32>, vector<5x128xf32>, vector<5x128xf32> -> vector<5x128xf32>
      %111 = math.log %110 : vector<5x128xf32>
      %112 = vector.broadcast %106 : vector<1x128xf32> to vector<5x128xf32>
      %113 = arith.addf %111, %112 : vector<5x128xf32>
      %114 = vector.broadcast %15 : vector<1x1xf32> to vector<5x128xf32>
      %115 = arith.addf %113, %114 : vector<5x128xf32>
      %116 = arith.addf %115, %95 : vector<5x128xf32>
      %117 = vector.shape_cast %100 : vector<1x128xi1> to vector<1x128xi1>
      %118 = vector.broadcast %117 : vector<1x128xi1> to vector<5x128xi1>
      %119 = arith.select %118, %116, %87 : vector<5x128xi1>, vector<5x128xf32>
      %cst_44 = arith.constant dense<0.000000e+00> : vector<5x128xf32>
      %120 = tpu.matmul %13, %72, %cst_44 {dimension_numbers = #tpu.dot_dimension_numbers<[1], [0], [0], [1], [0, 0, 1, 1], [], []>} : vector<5x5xf32>, vector<5x128xf32>, vector<5x128xf32> -> vector<5x128xf32>
      %121 = arith.addf %120, %95 : vector<5x128xf32>
      %122 = arith.mulf %121, %104 : vector<5x128xf32>
      %123 = arith.addf %91, %122 : vector<5x128xf32>
      %124 = arith.select %100, %98, %92 : vector<1x128xi1>, vector<1x128xi32>
      %c3_i32 = arith.constant 3 : i32
      %125 = arith.index_cast %c3_i32 : i32 to index
      %c0_45 = arith.constant 0 : index
      %c0_46 = arith.constant 0 : index
      %126 = vector.load %arg3[%125, %c0_45, %c0_46] : memref<8x5x128xf32, #tpu.memory_space<vmem>>, vector<1x5x128xf32>
      %127 = vector.shape_cast %126 : vector<1x5x128xf32> to vector<5x128xf32>
      %128 = arith.index_cast %c3_i32 : i32 to index
      %c0_47 = arith.constant 0 : index
      %c0_48 = arith.constant 0 : index
      %129 = vector.load %arg4[%128, %c0_47, %c0_48] : memref<8x1x128xi32, #tpu.memory_space<vmem>>, vector<1x1x128xi32>
      %130 = vector.shape_cast %129 : vector<1x1x128xi32> to vector<1x128xi32>
      %c0_i32_49 = arith.constant 0 : i32
      %131 = vector.broadcast %c0_i32_49 : i32 to vector<1x128xi32>
      %132 = arith.cmpi sge, %130, %131 : vector<1x128xi32>
      %133 = vector.broadcast %130 : vector<1x128xi32> to vector<5x128xi32>
      %134 = arith.cmpi eq, %133, %0 : vector<5x128xi32>
      %135 = arith.extui %134 : vector<5x128xi1> to vector<5x128xi32>
      %136 = arith.sitofp %135 : vector<5x128xi32> to vector<5x128xf32>
      %cst_50 = arith.constant dense<0xFF800000> : vector<128xf32>
      %137 = vector.multi_reduction <maximumf>, %119, %cst_50 [0] : vector<5x128xf32> to vector<128xf32>
      %138 = vector.shape_cast %137 : vector<128xf32> to vector<1x128xf32>
      %139 = vector.broadcast %138 : vector<1x128xf32> to vector<5x128xf32>
      %140 = arith.subf %119, %139 : vector<5x128xf32>
      %141 = math.exp %140 : vector<5x128xf32>
      %cst_51 = arith.constant dense<0.000000e+00> : vector<5x128xf32>
      %142 = tpu.matmul %14, %141, %cst_51 {dimension_numbers = #tpu.dot_dimension_numbers<[1], [0], [0], [1], [0, 0, 1, 1], [], []>} : vector<5x5xf32>, vector<5x128xf32>, vector<5x128xf32> -> vector<5x128xf32>
      %143 = math.log %142 : vector<5x128xf32>
      %144 = vector.broadcast %138 : vector<1x128xf32> to vector<5x128xf32>
      %145 = arith.addf %143, %144 : vector<5x128xf32>
      %146 = vector.broadcast %15 : vector<1x1xf32> to vector<5x128xf32>
      %147 = arith.addf %145, %146 : vector<5x128xf32>
      %148 = arith.addf %147, %127 : vector<5x128xf32>
      %149 = vector.shape_cast %132 : vector<1x128xi1> to vector<1x128xi1>
      %150 = vector.broadcast %149 : vector<1x128xi1> to vector<5x128xi1>
      %151 = arith.select %150, %148, %119 : vector<5x128xi1>, vector<5x128xf32>
      %cst_52 = arith.constant dense<0.000000e+00> : vector<5x128xf32>
      %152 = tpu.matmul %13, %104, %cst_52 {dimension_numbers = #tpu.dot_dimension_numbers<[1], [0], [0], [1], [0, 0, 1, 1], [], []>} : vector<5x5xf32>, vector<5x128xf32>, vector<5x128xf32> -> vector<5x128xf32>
      %153 = arith.addf %152, %127 : vector<5x128xf32>
      %154 = arith.mulf %153, %136 : vector<5x128xf32>
      %155 = arith.addf %123, %154 : vector<5x128xf32>
      %156 = arith.select %132, %130, %124 : vector<1x128xi1>, vector<1x128xi32>
      %c4_i32 = arith.constant 4 : i32
      %157 = arith.index_cast %c4_i32 : i32 to index
      %c0_53 = arith.constant 0 : index
      %c0_54 = arith.constant 0 : index
      %158 = vector.load %arg3[%157, %c0_53, %c0_54] : memref<8x5x128xf32, #tpu.memory_space<vmem>>, vector<1x5x128xf32>
      %159 = vector.shape_cast %158 : vector<1x5x128xf32> to vector<5x128xf32>
      %160 = arith.index_cast %c4_i32 : i32 to index
      %c0_55 = arith.constant 0 : index
      %c0_56 = arith.constant 0 : index
      %161 = vector.load %arg4[%160, %c0_55, %c0_56] : memref<8x1x128xi32, #tpu.memory_space<vmem>>, vector<1x1x128xi32>
      %162 = vector.shape_cast %161 : vector<1x1x128xi32> to vector<1x128xi32>
      %c0_i32_57 = arith.constant 0 : i32
      %163 = vector.broadcast %c0_i32_57 : i32 to vector<1x128xi32>
      %164 = arith.cmpi sge, %162, %163 : vector<1x128xi32>
      %165 = vector.broadcast %162 : vector<1x128xi32> to vector<5x128xi32>
      %166 = arith.cmpi eq, %165, %0 : vector<5x128xi32>
      %167 = arith.extui %166 : vector<5x128xi1> to vector<5x128xi32>
      %168 = arith.sitofp %167 : vector<5x128xi32> to vector<5x128xf32>
      %cst_58 = arith.constant dense<0xFF800000> : vector<128xf32>
      %169 = vector.multi_reduction <maximumf>, %151, %cst_58 [0] : vector<5x128xf32> to vector<128xf32>
      %170 = vector.shape_cast %169 : vector<128xf32> to vector<1x128xf32>
      %171 = vector.broadcast %170 : vector<1x128xf32> to vector<5x128xf32>
      %172 = arith.subf %151, %171 : vector<5x128xf32>
      %173 = math.exp %172 : vector<5x128xf32>
      %cst_59 = arith.constant dense<0.000000e+00> : vector<5x128xf32>
      %174 = tpu.matmul %14, %173, %cst_59 {dimension_numbers = #tpu.dot_dimension_numbers<[1], [0], [0], [1], [0, 0, 1, 1], [], []>} : vector<5x5xf32>, vector<5x128xf32>, vector<5x128xf32> -> vector<5x128xf32>
      %175 = math.log %174 : vector<5x128xf32>
      %176 = vector.broadcast %170 : vector<1x128xf32> to vector<5x128xf32>
      %177 = arith.addf %175, %176 : vector<5x128xf32>
      %178 = vector.broadcast %15 : vector<1x1xf32> to vector<5x128xf32>
      %179 = arith.addf %177, %178 : vector<5x128xf32>
      %180 = arith.addf %179, %159 : vector<5x128xf32>
      %181 = vector.shape_cast %164 : vector<1x128xi1> to vector<1x128xi1>
      %182 = vector.broadcast %181 : vector<1x128xi1> to vector<5x128xi1>
      %183 = arith.select %182, %180, %151 : vector<5x128xi1>, vector<5x128xf32>
      %cst_60 = arith.constant dense<0.000000e+00> : vector<5x128xf32>
      %184 = tpu.matmul %13, %136, %cst_60 {dimension_numbers = #tpu.dot_dimension_numbers<[1], [0], [0], [1], [0, 0, 1, 1], [], []>} : vector<5x5xf32>, vector<5x128xf32>, vector<5x128xf32> -> vector<5x128xf32>
      %185 = arith.addf %184, %159 : vector<5x128xf32>
      %186 = arith.mulf %185, %168 : vector<5x128xf32>
      %187 = arith.addf %155, %186 : vector<5x128xf32>
      %188 = arith.select %164, %162, %156 : vector<1x128xi1>, vector<1x128xi32>
      %c5_i32 = arith.constant 5 : i32
      %189 = arith.index_cast %c5_i32 : i32 to index
      %c0_61 = arith.constant 0 : index
      %c0_62 = arith.constant 0 : index
      %190 = vector.load %arg3[%189, %c0_61, %c0_62] : memref<8x5x128xf32, #tpu.memory_space<vmem>>, vector<1x5x128xf32>
      %191 = vector.shape_cast %190 : vector<1x5x128xf32> to vector<5x128xf32>
      %192 = arith.index_cast %c5_i32 : i32 to index
      %c0_63 = arith.constant 0 : index
      %c0_64 = arith.constant 0 : index
      %193 = vector.load %arg4[%192, %c0_63, %c0_64] : memref<8x1x128xi32, #tpu.memory_space<vmem>>, vector<1x1x128xi32>
      %194 = vector.shape_cast %193 : vector<1x1x128xi32> to vector<1x128xi32>
      %c0_i32_65 = arith.constant 0 : i32
      %195 = vector.broadcast %c0_i32_65 : i32 to vector<1x128xi32>
      %196 = arith.cmpi sge, %194, %195 : vector<1x128xi32>
      %197 = vector.broadcast %194 : vector<1x128xi32> to vector<5x128xi32>
      %198 = arith.cmpi eq, %197, %0 : vector<5x128xi32>
      %199 = arith.extui %198 : vector<5x128xi1> to vector<5x128xi32>
      %200 = arith.sitofp %199 : vector<5x128xi32> to vector<5x128xf32>
      %cst_66 = arith.constant dense<0xFF800000> : vector<128xf32>
      %201 = vector.multi_reduction <maximumf>, %183, %cst_66 [0] : vector<5x128xf32> to vector<128xf32>
      %202 = vector.shape_cast %201 : vector<128xf32> to vector<1x128xf32>
      %203 = vector.broadcast %202 : vector<1x128xf32> to vector<5x128xf32>
      %204 = arith.subf %183, %203 : vector<5x128xf32>
      %205 = math.exp %204 : vector<5x128xf32>
      %cst_67 = arith.constant dense<0.000000e+00> : vector<5x128xf32>
      %206 = tpu.matmul %14, %205, %cst_67 {dimension_numbers = #tpu.dot_dimension_numbers<[1], [0], [0], [1], [0, 0, 1, 1], [], []>} : vector<5x5xf32>, vector<5x128xf32>, vector<5x128xf32> -> vector<5x128xf32>
      %207 = math.log %206 : vector<5x128xf32>
      %208 = vector.broadcast %202 : vector<1x128xf32> to vector<5x128xf32>
      %209 = arith.addf %207, %208 : vector<5x128xf32>
      %210 = vector.broadcast %15 : vector<1x1xf32> to vector<5x128xf32>
      %211 = arith.addf %209, %210 : vector<5x128xf32>
      %212 = arith.addf %211, %191 : vector<5x128xf32>
      %213 = vector.shape_cast %196 : vector<1x128xi1> to vector<1x128xi1>
      %214 = vector.broadcast %213 : vector<1x128xi1> to vector<5x128xi1>
      %215 = arith.select %214, %212, %183 : vector<5x128xi1>, vector<5x128xf32>
      %cst_68 = arith.constant dense<0.000000e+00> : vector<5x128xf32>
      %216 = tpu.matmul %13, %168, %cst_68 {dimension_numbers = #tpu.dot_dimension_numbers<[1], [0], [0], [1], [0, 0, 1, 1], [], []>} : vector<5x5xf32>, vector<5x128xf32>, vector<5x128xf32> -> vector<5x128xf32>
      %217 = arith.addf %216, %191 : vector<5x128xf32>
      %218 = arith.mulf %217, %200 : vector<5x128xf32>
      %219 = arith.addf %187, %218 : vector<5x128xf32>
      %220 = arith.select %196, %194, %188 : vector<1x128xi1>, vector<1x128xi32>
      %c6_i32 = arith.constant 6 : i32
      %221 = arith.index_cast %c6_i32 : i32 to index
      %c0_69 = arith.constant 0 : index
      %c0_70 = arith.constant 0 : index
      %222 = vector.load %arg3[%221, %c0_69, %c0_70] : memref<8x5x128xf32, #tpu.memory_space<vmem>>, vector<1x5x128xf32>
      %223 = vector.shape_cast %222 : vector<1x5x128xf32> to vector<5x128xf32>
      %224 = arith.index_cast %c6_i32 : i32 to index
      %c0_71 = arith.constant 0 : index
      %c0_72 = arith.constant 0 : index
      %225 = vector.load %arg4[%224, %c0_71, %c0_72] : memref<8x1x128xi32, #tpu.memory_space<vmem>>, vector<1x1x128xi32>
      %226 = vector.shape_cast %225 : vector<1x1x128xi32> to vector<1x128xi32>
      %c0_i32_73 = arith.constant 0 : i32
      %227 = vector.broadcast %c0_i32_73 : i32 to vector<1x128xi32>
      %228 = arith.cmpi sge, %226, %227 : vector<1x128xi32>
      %229 = vector.broadcast %226 : vector<1x128xi32> to vector<5x128xi32>
      %230 = arith.cmpi eq, %229, %0 : vector<5x128xi32>
      %231 = arith.extui %230 : vector<5x128xi1> to vector<5x128xi32>
      %232 = arith.sitofp %231 : vector<5x128xi32> to vector<5x128xf32>
      %cst_74 = arith.constant dense<0xFF800000> : vector<128xf32>
      %233 = vector.multi_reduction <maximumf>, %215, %cst_74 [0] : vector<5x128xf32> to vector<128xf32>
      %234 = vector.shape_cast %233 : vector<128xf32> to vector<1x128xf32>
      %235 = vector.broadcast %234 : vector<1x128xf32> to vector<5x128xf32>
      %236 = arith.subf %215, %235 : vector<5x128xf32>
      %237 = math.exp %236 : vector<5x128xf32>
      %cst_75 = arith.constant dense<0.000000e+00> : vector<5x128xf32>
      %238 = tpu.matmul %14, %237, %cst_75 {dimension_numbers = #tpu.dot_dimension_numbers<[1], [0], [0], [1], [0, 0, 1, 1], [], []>} : vector<5x5xf32>, vector<5x128xf32>, vector<5x128xf32> -> vector<5x128xf32>
      %239 = math.log %238 : vector<5x128xf32>
      %240 = vector.broadcast %234 : vector<1x128xf32> to vector<5x128xf32>
      %241 = arith.addf %239, %240 : vector<5x128xf32>
      %242 = vector.broadcast %15 : vector<1x1xf32> to vector<5x128xf32>
      %243 = arith.addf %241, %242 : vector<5x128xf32>
      %244 = arith.addf %243, %223 : vector<5x128xf32>
      %245 = vector.shape_cast %228 : vector<1x128xi1> to vector<1x128xi1>
      %246 = vector.broadcast %245 : vector<1x128xi1> to vector<5x128xi1>
      %247 = arith.select %246, %244, %215 : vector<5x128xi1>, vector<5x128xf32>
      %cst_76 = arith.constant dense<0.000000e+00> : vector<5x128xf32>
      %248 = tpu.matmul %13, %200, %cst_76 {dimension_numbers = #tpu.dot_dimension_numbers<[1], [0], [0], [1], [0, 0, 1, 1], [], []>} : vector<5x5xf32>, vector<5x128xf32>, vector<5x128xf32> -> vector<5x128xf32>
      %249 = arith.addf %248, %223 : vector<5x128xf32>
      %250 = arith.mulf %249, %232 : vector<5x128xf32>
      %251 = arith.addf %219, %250 : vector<5x128xf32>
      %252 = arith.select %228, %226, %220 : vector<1x128xi1>, vector<1x128xi32>
      %c7_i32 = arith.constant 7 : i32
      %253 = arith.index_cast %c7_i32 : i32 to index
      %c0_77 = arith.constant 0 : index
      %c0_78 = arith.constant 0 : index
      %254 = vector.load %arg3[%253, %c0_77, %c0_78] : memref<8x5x128xf32, #tpu.memory_space<vmem>>, vector<1x5x128xf32>
      %255 = vector.shape_cast %254 : vector<1x5x128xf32> to vector<5x128xf32>
      %256 = arith.index_cast %c7_i32 : i32 to index
      %c0_79 = arith.constant 0 : index
      %c0_80 = arith.constant 0 : index
      %257 = vector.load %arg4[%256, %c0_79, %c0_80] : memref<8x1x128xi32, #tpu.memory_space<vmem>>, vector<1x1x128xi32>
      %258 = vector.shape_cast %257 : vector<1x1x128xi32> to vector<1x128xi32>
      %c0_i32_81 = arith.constant 0 : i32
      %259 = vector.broadcast %c0_i32_81 : i32 to vector<1x128xi32>
      %260 = arith.cmpi sge, %258, %259 : vector<1x128xi32>
      %261 = vector.broadcast %258 : vector<1x128xi32> to vector<5x128xi32>
      %262 = arith.cmpi eq, %261, %0 : vector<5x128xi32>
      %263 = arith.extui %262 : vector<5x128xi1> to vector<5x128xi32>
      %264 = arith.sitofp %263 : vector<5x128xi32> to vector<5x128xf32>
      %cst_82 = arith.constant dense<0xFF800000> : vector<128xf32>
      %265 = vector.multi_reduction <maximumf>, %247, %cst_82 [0] : vector<5x128xf32> to vector<128xf32>
      %266 = vector.shape_cast %265 : vector<128xf32> to vector<1x128xf32>
      %267 = vector.broadcast %266 : vector<1x128xf32> to vector<5x128xf32>
      %268 = arith.subf %247, %267 : vector<5x128xf32>
      %269 = math.exp %268 : vector<5x128xf32>
      %cst_83 = arith.constant dense<0.000000e+00> : vector<5x128xf32>
      %270 = tpu.matmul %14, %269, %cst_83 {dimension_numbers = #tpu.dot_dimension_numbers<[1], [0], [0], [1], [0, 0, 1, 1], [], []>} : vector<5x5xf32>, vector<5x128xf32>, vector<5x128xf32> -> vector<5x128xf32>
      %271 = math.log %270 : vector<5x128xf32>
      %272 = vector.broadcast %266 : vector<1x128xf32> to vector<5x128xf32>
      %273 = arith.addf %271, %272 : vector<5x128xf32>
      %274 = vector.broadcast %15 : vector<1x1xf32> to vector<5x128xf32>
      %275 = arith.addf %273, %274 : vector<5x128xf32>
      %276 = arith.addf %275, %255 : vector<5x128xf32>
      %277 = vector.shape_cast %260 : vector<1x128xi1> to vector<1x128xi1>
      %278 = vector.broadcast %277 : vector<1x128xi1> to vector<5x128xi1>
      %279 = arith.select %278, %276, %247 : vector<5x128xi1>, vector<5x128xf32>
      %cst_84 = arith.constant dense<0.000000e+00> : vector<5x128xf32>
      %280 = tpu.matmul %13, %232, %cst_84 {dimension_numbers = #tpu.dot_dimension_numbers<[1], [0], [0], [1], [0, 0, 1, 1], [], []>} : vector<5x5xf32>, vector<5x128xf32>, vector<5x128xf32> -> vector<5x128xf32>
      %281 = arith.addf %280, %255 : vector<5x128xf32>
      %282 = arith.mulf %281, %264 : vector<5x128xf32>
      %283 = arith.addf %251, %282 : vector<5x128xf32>
      %284 = arith.select %260, %258, %252 : vector<1x128xi1>, vector<1x128xi32>
      %c7_i32_85 = arith.constant 7 : i32
      %c0_86 = arith.constant 0 : index
      %c0_87 = arith.constant 0 : index
      %285 = vector.load %arg11[%c0_86, %c0_87] : memref<5x128xf32, #tpu.memory_space<vmem>>, vector<5x128xf32>
      tpu.vector_store %arg11[%c0_86, %c0_87], %279 {strides = array<i32>} : memref<5x128xf32, #tpu.memory_space<vmem>>, vector<5x128xf32>,
      %c0_88 = arith.constant 0 : index
      %c0_89 = arith.constant 0 : index
      %286 = vector.load %arg12[%c0_88, %c0_89] : memref<5x128xf32, #tpu.memory_space<vmem>>, vector<5x128xf32>
      tpu.vector_store %arg12[%c0_88, %c0_89], %283 {strides = array<i32>} : memref<5x128xf32, #tpu.memory_space<vmem>>, vector<5x128xf32>,
      %c7 = arith.constant 7 : index
      %c0_90 = arith.constant 0 : index
      %c0_91 = arith.constant 0 : index
      %287 = vector.load %arg4[%c7, %c0_90, %c0_91] : memref<8x1x128xi32, #tpu.memory_space<vmem>>, vector<1x1x128xi32>
      %288 = vector.shape_cast %287 : vector<1x1x128xi32> to vector<1x128xi32>
      %c0_92 = arith.constant 0 : index
      %c0_93 = arith.constant 0 : index
      %289 = vector.load %arg13[%c0_92, %c0_93] : memref<1x128xi32, #tpu.memory_space<vmem>>, vector<1x128xi32>
      tpu.vector_store %arg13[%c0_92, %c0_93], %288 {strides = array<i32>} : memref<1x128xi32, #tpu.memory_space<vmem>>, vector<1x128xi32>,
      %c0_94 = arith.constant 0 : index
      %c0_95 = arith.constant 0 : index
      %290 = vector.load %arg14[%c0_94, %c0_95] : memref<1x128xi32, #tpu.memory_space<vmem>>, vector<1x128xi32>
      tpu.vector_store %arg14[%c0_94, %c0_95], %284 {strides = array<i32>} : memref<1x128xi32, #tpu.memory_space<vmem>>, vector<1x128xi32>,
    } else {
    }
    %c0_i32_2 = arith.constant 0 : i32
    %10 = arith.cmpi eq, %arg1, %c0_i32_2 : i32
    %11 = arith.extui %10 : i1 to i32
    %c0_i32_3 = arith.constant 0 : i32
    %12 = arith.cmpi ne, %11, %c0_i32_3 : i32
    scf.if %12 {
      %c0 = arith.constant 0 : index
      %c0_4 = arith.constant 0 : index
      %13 = vector.load %arg9[%c0, %c0_4] : memref<5x1xf32, #tpu.memory_space<vmem>>, vector<5x1xf32>
      %c0_5 = arith.constant 0 : index
      %c0_6 = arith.constant 0 : index
      %14 = vector.load %arg11[%c0_5, %c0_6] : memref<5x128xf32, #tpu.memory_space<vmem>>, vector<5x128xf32>
      %15 = vector.broadcast %13 : vector<5x1xf32> to vector<5x128xf32>
      %16 = arith.addf %14, %15 : vector<5x128xf32>
      %cst = arith.constant dense<0xFF800000> : vector<128xf32>
      %17 = vector.multi_reduction <maximumf>, %16, %cst [0] : vector<5x128xf32> to vector<128xf32>
      %18 = vector.shape_cast %17 : vector<128xf32> to vector<1x128xf32>
      %19 = vector.broadcast %18 : vector<1x128xf32> to vector<5x128xf32>
      %20 = arith.subf %16, %19 : vector<5x128xf32>
      %21 = math.exp %20 : vector<5x128xf32>
      %cst_7 = arith.constant dense<0.000000e+00> : vector<128xf32>
      %22 = vector.multi_reduction <add>, %21, %cst_7 [0] : vector<5x128xf32> to vector<128xf32>
      %23 = vector.shape_cast %22 : vector<128xf32> to vector<1x128xf32>
      %24 = math.log %23 : vector<1x128xf32>
      %25 = arith.addf %24, %18 : vector<1x128xf32>
      %c0_8 = arith.constant 0 : index
      %c0_9 = arith.constant 0 : index
      %26 = vector.load %arg14[%c0_8, %c0_9] : memref<1x128xi32, #tpu.memory_space<vmem>>, vector<1x128xi32>
      %27 = vector.broadcast %26 : vector<1x128xi32> to vector<5x128xi32>
      %28 = arith.cmpi eq, %27, %0 : vector<5x128xi32>
      %29 = arith.extui %28 : vector<5x128xi1> to vector<5x128xi32>
      %30 = arith.sitofp %29 : vector<5x128xi32> to vector<5x128xf32>
      %31 = vector.broadcast %13 : vector<5x1xf32> to vector<5x128xf32>
      %32 = arith.mulf %30, %31 : vector<5x128xf32>
      %cst_10 = arith.constant dense<0.000000e+00> : vector<128xf32>
      %33 = vector.multi_reduction <add>, %32, %cst_10 [0] : vector<5x128xf32> to vector<128xf32>
      %34 = vector.shape_cast %33 : vector<128xf32> to vector<1x128xf32>
      %c0_11 = arith.constant 0 : index
      %c0_12 = arith.constant 0 : index
      %35 = vector.load %arg12[%c0_11, %c0_12] : memref<5x128xf32, #tpu.memory_space<vmem>>, vector<5x128xf32>
      %cst_13 = arith.constant dense<0.000000e+00> : vector<128xf32>
      %36 = vector.multi_reduction <add>, %35, %cst_13 [0] : vector<5x128xf32> to vector<128xf32>
      %37 = vector.shape_cast %36 : vector<128xf32> to vector<1x128xf32>
      %38 = arith.addf %37, %34 : vector<1x128xf32>
      %39 = arith.subf %38, %25 : vector<1x128xf32>
      %c0_14 = arith.constant 0 : index
      %c0_15 = arith.constant 0 : index
      %40 = vector.load %arg10[%c0_14, %c0_15] : memref<1x128xf32, #tpu.memory_space<vmem>>, vector<1x128xf32>
      tpu.vector_store %arg10[%c0_14, %c0_15], %39 {strides = array<i32>} : memref<1x128xf32, #tpu.memory_space<vmem>>, vector<1x128xf32>,
    } else {
    }
    return
  }
  func.func @transform_0(%arg0: i32, %arg1: i32, %arg2: memref<1xi32, #tpu.memory_space<smem>>) -> (i32, i32, i32) {
    %c0_i32 = arith.constant 0 : i32
    %c0_i32_0 = arith.constant 0 : i32
    return %arg1, %c0_i32, %arg0 : i32, i32, i32
  }
  func.func @transform_1(%arg0: i32, %arg1: i32, %arg2: memref<1xi32, #tpu.memory_space<smem>>) -> (i32, i32, i32) {
    %c0_i32 = arith.constant 0 : i32
    %c0_i32_0 = arith.constant 0 : i32
    return %arg1, %c0_i32, %arg0 : i32, i32, i32
  }
  func.func @transform_2(%arg0: i32, %arg1: i32, %arg2: memref<1xi32, #tpu.memory_space<smem>>) -> (i32, i32) {
    %c0_i32 = arith.constant 0 : i32
    %c0_i32_0 = arith.constant 0 : i32
    %c0_i32_1 = arith.constant 0 : i32
    return %c0_i32, %c0_i32_0 : i32, i32
  }
  func.func @transform_3(%arg0: i32, %arg1: i32, %arg2: memref<1xi32, #tpu.memory_space<smem>>) -> (i32, i32) {
    %c0_i32 = arith.constant 0 : i32
    %c0_i32_0 = arith.constant 0 : i32
    %c0_i32_1 = arith.constant 0 : i32
    return %c0_i32, %c0_i32_0 : i32, i32
  }
  func.func @transform_4(%arg0: i32, %arg1: i32, %arg2: memref<1xi32, #tpu.memory_space<smem>>) -> (i32, i32) {
    %c0_i32 = arith.constant 0 : i32
    %c0_i32_0 = arith.constant 0 : i32
    %c0_i32_1 = arith.constant 0 : i32
    return %c0_i32, %c0_i32_0 : i32, i32
  }
  func.func @transform_5(%arg0: i32, %arg1: i32, %arg2: memref<1xi32, #tpu.memory_space<smem>>) -> (i32, i32) {
    %c0_i32 = arith.constant 0 : i32
    %c0_i32_0 = arith.constant 0 : i32
    %c0_i32_1 = arith.constant 0 : i32
    return %c0_i32, %c0_i32_0 : i32, i32
  }
  func.func @transform_6(%arg0: i32, %arg1: i32, %arg2: memref<1xi32, #tpu.memory_space<smem>>) -> (i32, i32) {
    %c0_i32 = arith.constant 0 : i32
    %c0_i32_0 = arith.constant 0 : i32
    %c0_i32_1 = arith.constant 0 : i32
    return %c0_i32, %c0_i32_0 : i32, i32
  }
  func.func @transform_7(%arg0: i32, %arg1: i32, %arg2: memref<1xi32, #tpu.memory_space<smem>>) -> (i32, i32) {
    %c0_i32 = arith.constant 0 : i32
    %c0_i32_0 = arith.constant 0 : i32
    return %c0_i32, %arg0 : i32, i32
  }
}

</mosaic_0001>

<bundles_post_ra>
// kernel: tpu_custom_call.1
= control target key start
LH: loop header
LB: loop body
LE: loop exit
PB: predicated region body
PF: predicated region fallthrough
CT: control target
= control target key end

     0   :  { %s1256_s0 = inlined_call_operand.<no memory space> [shape: s32[1], index: 0, kind: input, shape index: {}]   ;;  %s1257_s1 = inlined_call_operand.vmem [shape: f32[8,5,128], index: 1, kind: input, shape index: {}]   ;;  %s1258_s2 = inlined_call_operand.vmem [shape: s32[8,1,128], index: 2, kind: input, shape index: {}]   ;;  %s1259_s3 = inlined_call_operand.vmem [shape: f32[5,5], index: 3, kind: input, shape index: {}]   ;;  %s1260_s4 = inlined_call_operand.vmem [shape: f32[5,5], index: 4, kind: input, shape index: {}]   ;;  %s1261_s5 = inlined_call_operand.<no memory space> [shape: f32[1,1], index: 5, kind: input, shape index: {}]   ;;  %s1262_s6 = inlined_call_operand.vmem [shape: f32[5,1], index: 6, kind: input, shape index: {}]   ;;  %s1263_s7 = inlined_call_operand.vmem [shape: f32[5,1], index: 7, kind: input, shape index: {}]   ;;  %s1264_s8 = inlined_call_operand.hbm [shape: f32[1,128], index: 8, kind: output, shape index: {}]  }
   0x1   :  { %v14_v0 = vstv %s1261_s5 }
   0x2   :  { %15 = vst [vmem:[#allocation8] sm:$0x1] %v14_v0 }
   0x3   :  { %16 = vsyncpa [#allocation10], 0  ;;  %v31_v1 = vlaneseq  ;;  %v912_v2 = vmov 0.0   ;;  %v913_v4 = vmov 4294967295   ;;  %p774_p0 = scmp.le.s32.totalorder %s1256_s0, 0 }
   0x4   :  { %37 = vst [vmem:[#allocation3] sm:$0x1f] %v912_v2 }
   0x5   :  { %v968_v3 = vshrl.u32 %v31_v1, 7  ;;  %38 = vst [vmem:[#allocation4] sm:$0x1] %v913_v4  ;;  %45 = sbr.rel (%p774_p0) target bundleno = 1324 (0x52c), region = 37 }
   0x6   :  { %39 = vst [vmem:[#allocation5] sm:$0x1] %v913_v4 }
   0xa   :  { %v49_v5 = vld [vmem:[%s1262_s6] sm:$0x1f]  ;;  %v914_v6 = vmov 0   ;;  %v840_v7 = vld [vmem:[#allocation8] ss:$0 sm:$0xff]  ;;  %v915_v8 = vmov 1  }
   0xb   :  { %839 = vset.pattern.permute.xlu0 %v914_v6  ;;  %v125_v9 = vperm.slane %v915_v8, 0  ;;  %v980_v10 = vld [vmem:[%s1257_s1] sm:$0x1f]  ;;  %vm65_vm1 = vcmask 1044480   ;;  %vm76_vm2 = vcmask 39936  }
   0xc   :  { %115 = vperm.xlu0 %839, %v49_v5   ;;  %v55_v11 = vld [vmem:[#allocation2] sm:$0x1f]  ;;  %v1010_v44 = vld [vmem:[%s1257_s1 + $0x8] sm:$0x1f]  ;;  %v1030_v4 = vld [vmem:[%s1257_s1 + $0x10] sm:$0x1f] }
   0xd   :  { %vm126_vm0 = vcmp.eq.s32.totalorder %v125_v9, 1  ;;  %v987_v24 = vld [vmem:[%s1260_s4] sm:$0x1f]  ;;  %v66_v26 = vsel %vm65_vm1, %v55_v11, -inf }
   0xe   :  { %v67_v27 = vrot.slane %v66_v26, 4  ;;  %v996_v36 = vld [vmem:[%s1258_s2 + $0x1] sm:$0x1]  ;;  %v1021_v59 = vld [vmem:[%s1258_s2 + $0x2] sm:$0x1] }
   0xf   :  { %vm161_vm3 = vcmp.ge.s32.totalorder %v996_v36, 0  ;;  %vm238_vm5 = vcmp.ge.s32.totalorder %v1021_v59, 0 }
  0x10   :  { %v68_v28 = vmax.f32 %v66_v26, %v67_v27  ;;  %v204_v38 = vsel %vm161_vm3, 1, %v914_v6  ;;  %v281_v61 = vsel %vm238_vm5, 1, %v914_v6 }
  0x11   :  { %v205_v41 = vperm.slane %v204_v38, 0  ;;  %v282_v0 = vperm.slane %v281_v61, 0 }
  0x12   :  { %v69_v29 = vrot.slane %v68_v28, 2 }
  0x13   :  { %vm206_vm4 = vcmp.eq.s32.totalorder %v205_v41, 1  ;;  %vm283_vm6 = vcmp.eq.s32.totalorder %v282_v0, 1 }
  0x14   :  { %109 = vperm.xlu0 %839, %v840_v7   ;;  %v70_v30 = vmax.f32 %v68_v28, %v69_v29  ;;  %v1050_v28 = vld [vmem:[%s1257_s1 + $0x18] sm:$0x1f] }
  0x16   :  { %v71_v31 = vrot.slane %v70_v30, 1 }
  0x18   :  { %v72_v32 = vmax.f32 %v70_v30, %v71_v31 }
  0x1a   :  { %v73_v33 = vsub.f32 %v55_v11, %v72_v32 }
  0x1c   :  { %v74_v34 = vmul.f32 1.442695, %v73_v33 }
  0x7e   :  { %v116_v12 = vpop.permute.xlu0 %115 }
  0x7f   :  { %v122_v13 = vadd.f32 %v116_v12, %v980_v10 }
  0x81   :  { %v127_v14 = vsel %vm126_vm0, %v122_v13, %v55_v11 }
  0x82   :  { %v166_v15 = vsel %vm65_vm1, %v127_v14, -inf }
  0x83   :  { %v167_v16 = vrot.slane %v166_v15, 4 }
  0x85   :  { %v168_v17 = vmax.f32 %v166_v15, %v167_v16 }
  0x86   :  { %v1005_v43 = vpop.permute.xlu0 %109 }
  0x87   :  { %v169_v18 = vrot.slane %v168_v17, 2 }
  0x89   :  { %v170_v19 = vmax.f32 %v168_v17, %v169_v18 }
  0x8b   :  { %v171_v20 = vrot.slane %v170_v19, 1 }
  0x8d   :  { %v172_v21 = vmax.f32 %v170_v19, %v171_v20  ;;  %v1041_v20 = vld [vmem:[%s1258_s2 + $0x3] sm:$0x1] }
  0x8e   :  { %vm315_vm7 = vcmp.ge.s32.totalorder %v1041_v20, 0 }
  0x8f   :  { %v173_v22 = vsub.f32 %v127_v14, %v172_v21 }
  0x91   :  { %v174_v23 = vmul.f32 1.442695, %v173_v22  ;;  %v358_v22 = vsel %vm315_vm7, 1, %v914_v6 }
  0x92   :  { %v359_v26 = vperm.slane %v358_v22, 0 }
  0x93   :  { %850 = vpow2.f32 %v174_v23 }
  0x94   :  { %852 = vpow2.f32 %v74_v34  ;;  %vm360_vm8 = vcmp.eq.s32.totalorder %v359_v26, 1 }
  0x99   :  { %v851_v25 = vpop.eup %850 }
  0x9a   :  { %784 = vmatpush.msk.msra.mxu2 %vm65_vm1, %v851_v25  ;;  %v853_v35 = vpop.eup %852 }
  0x9b   :  { %785 = vmatmul.msk.f32.vlgmr.msra.gmra.mxu2 %vm76_vm2, %v987_v24  ;;  %777 = vmatpush.msk.msra.mxu0 %vm65_vm1, %v853_v35 }
  0x9c   :  { %778 = vmatmul.msk.f32.vlgmr.msra.gmra.mxu0 %vm76_vm2, %v987_v24 }
 0x119   :  { %v100_v58 = vpop.f32.mrf.mxu0 }
 0x11e   :  { %v196_v37 = vpop.f32.mrf.mxu2 }
 0x11f   :  { %854 = vlog2.f32 %v196_v37 }
 0x125   :  { %v855_v39 = vpop.eup %854 }
 0x126   :  { %v200_v40 = vmul.f32 0.6931472, %v855_v39 }
 0x128   :  { %v201_v42 = vadd.f32 %v200_v40, %v172_v21 }
 0x12a   :  { %v202_v45 = vadd.f32 %v201_v42, %v1005_v43 }
 0x12c   :  { %v203_v46 = vadd.f32 %v1010_v44, %v202_v45  ;;  %v1061_v45 = vld [vmem:[%s1258_s2 + $0x4] sm:$0x1] }
 0x12d   :  { %vm392_vm9 = vcmp.ge.s32.totalorder %v1061_v45, 0 }
 0x12e   :  { %v207_v47 = vsel %vm206_vm4, %v203_v46, %v127_v14 }
 0x12f   :  { %v243_v48 = vsel %vm65_vm1, %v207_v47, -inf }
 0x130   :  { %v244_v49 = vrot.slane %v243_v48, 4 }
 0x132   :  { %v245_v50 = vmax.f32 %v243_v48, %v244_v49 }
 0x134   :  { %v246_v51 = vrot.slane %v245_v50, 2 }
 0x136   :  { %v247_v52 = vmax.f32 %v245_v50, %v246_v51 }
 0x138   :  { %v248_v53 = vrot.slane %v247_v52, 1 }
 0x13a   :  { %v249_v54 = vmax.f32 %v247_v52, %v248_v53  ;;  %v1070_v52 = vld [vmem:[%s1257_s1 + $0x20] sm:$0x1f] }
 0x13c   :  { %v250_v55 = vsub.f32 %v207_v47, %v249_v54 }
 0x13e   :  { %v251_v56 = vmul.f32 1.442695, %v250_v55 }
 0x140   :  { %856 = vpow2.f32 %v251_v56 }
 0x146   :  { %v857_v57 = vpop.eup %856 }
 0x147   :  { %791 = vmatpush.msk.msrb.mxu0 %vm65_vm1, %v857_v57 }
 0x148   :  { %792 = vmatmul.msk.f32.vlgmr.msrb.gmra.mxu0 %vm76_vm2, %v987_v24 }
 0x1c5   :  { %v273_v60 = vpop.f32.mrf.mxu0 }
 0x1c6   :  { %858 = vlog2.f32 %v273_v60 }
 0x1cc   :  { %v859_v62 = vpop.eup %858 }
 0x1cd   :  { %v277_v63 = vmul.f32 0.6931472, %v859_v62 }
 0x1cf   :  { %v278_v1 = vadd.f32 %v277_v63, %v249_v54 }
 0x1d1   :  { %v279_v5 = vadd.f32 %v278_v1, %v1005_v43 }
 0x1d3   :  { %v280_v7 = vadd.f32 %v1030_v4, %v279_v5 }
 0x1d5   :  { %v284_v8 = vsel %vm283_vm6, %v280_v7, %v207_v47  ;;  %v435_v47 = vsel %vm392_vm9, 1, %v914_v6  ;;  %v1081_v7 = vld [vmem:[%s1258_s2 + $0x5] sm:$0x1] }
 0x1d6   :  { %v320_v9 = vsel %vm65_vm1, %v284_v8, -inf  ;;  %v436_v50 = vperm.slane %v435_v47, 0  ;;  %vm469_vm11 = vcmp.ge.s32.totalorder %v1081_v7, 0 }
 0x1d7   :  { %v321_v11 = vrot.slane %v320_v9, 4 }
 0x1d8   :  { %vm437_vm10 = vcmp.eq.s32.totalorder %v436_v50, 1 }
 0x1d9   :  { %v322_v12 = vmax.f32 %v320_v9, %v321_v11  ;;  %v512_v9 = vsel %vm469_vm11, 1, %v914_v6 }
 0x1db   :  { %v323_v13 = vrot.slane %v322_v12, 2 }
 0x1dd   :  { %v324_v14 = vmax.f32 %v322_v12, %v323_v13  ;;  %v513_v13 = vperm.slane %v512_v9, 0 }
 0x1df   :  { %v325_v15 = vrot.slane %v324_v14, 1  ;;  %vm514_vm12 = vcmp.eq.s32.totalorder %v513_v13, 1 }
 0x1e1   :  { %v326_v16 = vmax.f32 %v324_v14, %v325_v15  ;;  %v1090_v15 = vld [vmem:[%s1257_s1 + $0x28] sm:$0x1f] }
 0x1e3   :  { %v327_v17 = vsub.f32 %v284_v8, %v326_v16 }
 0x1e5   :  { %v328_v18 = vmul.f32 1.442695, %v327_v17 }
 0x1e7   :  { %860 = vpow2.f32 %v328_v18 }
 0x1ed   :  { %v861_v19 = vpop.eup %860 }
 0x1ee   :  { %798 = vmatpush.msk.msrb.mxu2 %vm65_vm1, %v861_v19 }
 0x1ef   :  { %799 = vmatmul.msk.f32.vlgmr.msrb.gmra.mxu2 %vm76_vm2, %v987_v24 }
 0x272   :  { %v350_v21 = vpop.f32.mrf.mxu2 }
 0x273   :  { %862 = vlog2.f32 %v350_v21 }
 0x279   :  { %v863_v23 = vpop.eup %862 }
 0x27a   :  { %v354_v25 = vmul.f32 0.6931472, %v863_v23 }
 0x27c   :  { %v355_v27 = vadd.f32 %v354_v25, %v326_v16 }
 0x27e   :  { %v356_v29 = vadd.f32 %v355_v27, %v1005_v43 }
 0x280   :  { %v357_v30 = vadd.f32 %v1050_v28, %v356_v29 }
 0x282   :  { %v361_v31 = vsel %vm360_vm8, %v357_v30, %v284_v8 }
 0x283   :  { %v397_v32 = vsel %vm65_vm1, %v361_v31, -inf }
 0x284   :  { %v398_v33 = vrot.slane %v397_v32, 4 }
 0x286   :  { %v399_v34 = vmax.f32 %v397_v32, %v398_v33  ;;  %v841_v32 = vld [vmem:[%s1258_s2] ss:$0 sm:$0xff]  ;;  %v916_v33 = vmov 0.0  }
 0x287   :  { %vm62_vm13 = vcmp.eq.s32.totalorder %v841_v32, %v968_v3 }
 0x288   :  { %v400_v35 = vrot.slane %v399_v34, 2 }
 0x28a   :  { %v401_v37 = vmax.f32 %v399_v34, %v400_v35  ;;  %v1107_v34 = vsel %vm62_vm13, 1.0, %v916_v33  ;;  %v46_v35 = vld [vmem:[%s1259_s3] sm:$0x1f] }
 0x28b   :  { %786 = vmatpush.msk.msra.mxu3 %vm65_vm1, %v1107_v34 }
 0x28c   :  { %v402_v38 = vrot.slane %v401_v37, 1  ;;  %787 = vmatmul.msk.f32.vlgmr.msra.gmra.mxu3 %vm76_vm2, %v46_v35 }
 0x28e   :  { %v403_v39 = vmax.f32 %v401_v37, %v402_v38  ;;  %v842_v37 = vld [vmem:[#allocation4] ss:$0 sm:$0xff] }
 0x28f   :  { %vm52_vm14 = vcmp.eq.s32.totalorder %v842_v37, %v968_v3 }
 0x290   :  { %v404_v40 = vsub.f32 %v361_v31, %v403_v39  ;;  %v775_v38 = vsel %vm52_vm14, 1.0, %v916_v33 }
 0x291   :  { %779 = vmatpush.msk.msra.mxu1 %vm65_vm1, %v775_v38 }
 0x292   :  { %v405_v41 = vmul.f32 1.442695, %v404_v40  ;;  %780 = vmatmul.msk.f32.vlgmr.msra.gmra.mxu1 %vm76_vm2, %v46_v35 }
 0x294   :  { %864 = vpow2.f32 %v405_v41  ;;  %v844_v41 = vld [vmem:[%s1258_s2 + $0x1] ss:$0 sm:$0xff] }
 0x295   :  { %vm163_vm0 = vcmp.eq.s32.totalorder %v844_v41, %v968_v3 }
 0x29a   :  { %v865_v42 = vpop.eup %864 }
 0x29b   :  { %805 = vmatpush.msk.msra.mxu0 %vm65_vm1, %v865_v42  ;;  %v783_v42 = vsel %vm163_vm0, 1.0, %v916_v33 }
 0x29c   :  { %806 = vmatmul.msk.f32.vlgmr.msra.gmra.mxu0 %vm76_vm2, %v987_v24  ;;  %793 = vmatpush.msk.msrb.mxu1 %vm65_vm1, %v783_v42 }
 0x29d   :  { %794 = vmatmul.msk.f32.vlgmr.msrb.gmra.mxu1 %vm76_vm2, %v46_v35 }
 0x319   :  { %v427_v46 = vpop.f32.mrf.mxu0 }
 0x31a   :  { %866 = vlog2.f32 %v427_v46  ;;  %v845_v46 = vld [vmem:[%s1258_s2 + $0x4] ss:$0 sm:$0xff] }
 0x31b   :  { %vm394_vm4 = vcmp.eq.s32.totalorder %v845_v46, %v968_v3 }
 0x31c   :  { %v1141_v47 = vsel %vm394_vm4, 1.0, %v916_v33 }
 0x320   :  { %v867_v48 = vpop.eup %866 }
 0x321   :  { %v431_v49 = vmul.f32 0.6931472, %v867_v48  ;;  %v846_v48 = vld [vmem:[%s1258_s2 + $0x3] ss:$0 sm:$0xff] }
 0x322   :  { %vm317_vm6 = vcmp.eq.s32.totalorder %v846_v48, %v968_v3 }
 0x323   :  { %v432_v51 = vadd.f32 %v431_v49, %v403_v39  ;;  %v843_v39 = vld [vmem:[%s1258_s2 + $0x2] ss:$0 sm:$0xff]  ;;  %v1151_v49 = vld [vmem:[%s1258_s2 + $0x6] sm:$0x1] }
 0x324   :  { %vm240_vm15 = vcmp.eq.s32.totalorder %v843_v39, %v968_v3  ;;  %vm546_vm8 = vcmp.ge.s32.totalorder %v1151_v49, 0 }
 0x325   :  { %v433_v53 = vadd.f32 %v432_v51, %v1005_v43  ;;  %v1124_v40 = vsel %vm240_vm15, 1.0, %v916_v33  ;;  %v830_v51 = vld [vmem:[%s1258_s2 + $0x7] sm:$0x1] }
 0x326   :  { %800 = vmatpush.msk.msrb.mxu3 %vm65_vm1, %v1124_v40  ;;  %699 = vst [vmem:[#allocation4] sm:$0x1] %v830_v51 }
 0x327   :  { %v434_v54 = vadd.f32 %v1070_v52, %v433_v53  ;;  %801 = vmatmul.msk.f32.vlgmr.msrb.gmra.mxu3 %vm76_vm2, %v46_v35  ;;  %v797_v53 = vsel %vm317_vm6, 1.0, %v916_v33 }
 0x328   :  { %814 = vmatpush.msk.msra.mxu3 %vm65_vm1, %v1141_v47  ;;  %807 = vmatpush.msk.msra.mxu1 %vm65_vm1, %v797_v53 }
 0x329   :  { %v438_v55 = vsel %vm437_vm10, %v434_v54, %v361_v31  ;;  %v847_v54 = vld [vmem:[%s1258_s2 + $0x6] ss:$0 sm:$0xff]  ;;  %808 = vmatmul.msk.f32.vlgmr.msra.gmra.mxu1 %vm76_vm2, %v46_v35 }
 0x32a   :  { %v474_v56 = vsel %vm65_vm1, %v438_v55, -inf  ;;  %vm548_vm10 = vcmp.eq.s32.totalorder %v847_v54, %v968_v3 }
 0x32b   :  { %v475_v57 = vrot.slane %v474_v56, 4 }
 0x32d   :  { %v476_v58 = vmax.f32 %v474_v56, %v475_v57  ;;  %v1170_v56 = vsel %vm548_vm10, 1.0, %v916_v33 }
 0x32e   :  { %828 = vmatpush.msk.msrb.mxu3 %vm65_vm1, %v1170_v56 }
 0x32f   :  { %v477_v60 = vrot.slane %v476_v58, 2  ;;  %815 = vmatmul.msk.f32.vlgmr.msra.gmra.mxu3 %vm76_vm2, %v46_v35 }
 0x331   :  { %v478_v61 = vmax.f32 %v476_v58, %v477_v60  ;;  %v848_v58 = vld [vmem:[%s1258_s2 + $0x5] ss:$0 sm:$0xff] }
 0x333   :  { %v479_v62 = vrot.slane %v478_v61, 1 }
 0x335   :  { %v480_v63 = vmax.f32 %v478_v61, %v479_v62 }
 0x337   :  { %v481_v0 = vsub.f32 %v438_v55, %v480_v63  ;;  %829 = vmatmul.msk.f32.vlgmr.msrb.gmra.mxu3 %vm76_vm2, %v46_v35 }
 0x339   :  { %v482_v1 = vmul.f32 1.442695, %v481_v0  ;;  %v816_v0 = vld [vmem:[%s1257_s1 + $0x30] sm:$0x1f] }
 0x33b   :  { %868 = vpow2.f32 %v482_v1 }
 0x341   :  { %v869_v5 = vpop.eup %868 }
 0x342   :  { %812 = vmatpush.msk.msra.mxu2 %vm65_vm1, %v869_v5 }
 0x343   :  { %813 = vmatmul.msk.f32.vlgmr.msra.gmra.mxu2 %vm76_vm2, %v987_v24 }
 0x3c6   :  { %v504_v8 = vpop.f32.mrf.mxu2 }
 0x3c7   :  { %870 = vlog2.f32 %v504_v8 }
 0x3cd   :  { %v871_v11 = vpop.eup %870 }
 0x3ce   :  { %v508_v12 = vmul.f32 0.6931472, %v871_v11 }
 0x3d0   :  { %v509_v14 = vadd.f32 %v508_v12, %v480_v63 }
 0x3d2   :  { %v510_v16 = vadd.f32 %v509_v14, %v1005_v43 }
 0x3d4   :  { %v511_v17 = vadd.f32 %v1090_v15, %v510_v16 }
 0x3d6   :  { %v1094_v18 = vsel %vm514_vm12, %v511_v17, %v438_v55  ;;  %v589_v55 = vsel %vm546_vm8, 1, %v914_v6  ;;  %vm471_vm12 = vcmp.eq.s32.totalorder %v848_v58, %v968_v3 }
 0x3d7   :  { %v551_v19 = vsel %vm65_vm1, %v1094_v18, -inf  ;;  %v590_v61 = vperm.slane %v589_v55, 0  ;;  %v811_v63 = vsel %vm471_vm12, 1.0, %v916_v33 }
 0x3d8   :  { %v552_v21 = vrot.slane %v551_v19, 4  ;;  %821 = vmatpush.msk.msrb.mxu1 %vm65_vm1, %v811_v63 }
 0x3d9   :  { %vm591_vm13 = vcmp.eq.s32.totalorder %v590_v61, 1  ;;  %822 = vmatmul.msk.f32.vlgmr.msrb.gmra.mxu1 %vm76_vm2, %v46_v35 }
 0x3da   :  { %v553_v22 = vmax.f32 %v551_v19, %v552_v21 }
 0x3dc   :  { %v554_v23 = vrot.slane %v553_v22, 2 }
 0x3de   :  { %v555_v25 = vmax.f32 %v553_v22, %v554_v23 }
 0x3e0   :  { %v556_v26 = vrot.slane %v555_v25, 1 }
 0x3e2   :  { %v557_v27 = vmax.f32 %v555_v25, %v556_v26  ;;  %v228_v25 = vpop.f32.mrf.mxu3  ;;  %v56_v26 = vld [vmem:[#allocation3] sm:$0x1f] }
 0x3e4   :  { %v558_v29 = vsub.f32 %v1094_v18, %v557_v27 }
 0x3e6   :  { %v559_v30 = vmul.f32 1.442695, %v558_v29  ;;  %v229_v29 = vadd.f32 %v1010_v44, %v228_v25 }
 0x3e8   :  { %872 = vpow2.f32 %v559_v30 }
 0x3ea   :  { %v382_v38 = vpop.f32.mrf.mxu3 }
 0x3ee   :  { %v873_v31 = vpop.eup %872 }
 0x3ef   :  { %819 = vmatpush.msk.msrb.mxu0 %vm65_vm1, %v873_v31  ;;  %v231_v31 = vmul.f32 %v783_v42, %v229_v29 }
 0x3f0   :  { %820 = vmatmul.msk.f32.vlgmr.msrb.gmra.mxu0 %vm76_vm2, %v987_v24 }
 0x3f2   :  { %v536_v42 = vpop.f32.mrf.mxu3 }
 0x46d   :  { %v581_v50 = vpop.f32.mrf.mxu0 }
 0x46e   :  { %874 = vlog2.f32 %v581_v50  ;;  %v537_v50 = vadd.f32 %v1090_v15, %v536_v42  ;;  %v823_v15 = vld [vmem:[%s1257_s1 + $0x38] sm:$0x1f] }
 0x470   :  { %v539_v54 = vmul.f32 %v811_v63, %v537_v50 }
 0x474   :  { %v875_v57 = vpop.eup %874 }
 0x475   :  { %v585_v60 = vmul.f32 0.6931472, %v875_v57 }
 0x477   :  { %v586_v62 = vadd.f32 %v585_v60, %v557_v27  ;;  %v690_v60 = vpop.f32.mrf.mxu3 }
 0x479   :  { %v587_v1 = vadd.f32 %v586_v62, %v1005_v43 }
 0x47b   :  { %v588_v5 = vadd.f32 %v816_v0, %v587_v1 }
 0x47d   :  { %v1187_v8 = vsel %vm591_vm13, %v588_v5, %v1094_v18  ;;  %v151_v18 = vpop.f32.mrf.mxu1 }
 0x47e   :  { %v628_v9 = vsel %vm65_vm1, %v1187_v8, -inf  ;;  %v152_v23 = vadd.f32 %v151_v18, %v980_v10  ;;  %v59_v10 = vld [vmem:[%s1258_s2] sm:$0x1] }
 0x47f   :  { %v629_v11 = vrot.slane %v628_v9, 4 }
 0x480   :  { %v154_v27 = vmul.f32 %v1107_v34, %v152_v23 }
 0x481   :  { %v630_v12 = vmax.f32 %v628_v9, %v629_v11 }
 0x482   :  { %v155_v30 = vadd.f32 %v154_v27, %v56_v26 }
 0x483   :  { %v631_v13 = vrot.slane %v630_v12, 2 }
 0x484   :  { %v232_v37 = vadd.f32 %v231_v31, %v155_v30 }
 0x485   :  { %v632_v14 = vmax.f32 %v630_v12, %v631_v13  ;;  %v305_v32 = vpop.f32.mrf.mxu1 }
 0x486   :  { %v306_v35 = vadd.f32 %v1030_v4, %v305_v32  ;;  %v57_v4 = vld [vmem:[#allocation5] sm:$0x1] }
 0x487   :  { %v633_v16 = vrot.slane %v632_v14, 1 }
 0x488   :  { %v308_v39 = vmul.f32 %v1124_v40, %v306_v35 }
 0x489   :  { %v1191_v17 = vmax.f32 %v632_v14, %v633_v16 }
 0x48a   :  { %v309_v41 = vadd.f32 %v308_v39, %v232_v37 }
 0x48b   :  { %v635_v19 = vsub.f32 %v1187_v8, %v1191_v17 }
 0x48d   :  { %v636_v21 = vmul.f32 1.442695, %v635_v19  ;;  %v459_v34 = vpop.f32.mrf.mxu1 }
 0x48e   :  { %v460_v44 = vadd.f32 %v1070_v52, %v459_v34 }
 0x48f   :  { %876 = vpow2.f32 %v636_v21 }
 0x490   :  { %v462_v51 = vmul.f32 %v1141_v47, %v460_v44  ;;  %v691_v47 = vadd.f32 %v823_v15, %v690_v60 }
 0x495   :  { %v877_v22 = vpop.eup %876  ;;  %v613_v55 = vpop.f32.mrf.mxu1 }
 0x496   :  { %826 = vmatpush.msk.msrb.mxu2 %vm65_vm1, %v877_v22  ;;  %vm60_vm1 = vcmp.ge.s32.totalorder %v59_v10, 0  ;;  %v614_v58 = vadd.f32 %v816_v0, %v613_v55 }
 0x497   :  { %827 = vmatmul.msk.f32.vlgmr.msrb.gmra.mxu2 %vm76_vm2, %v987_v24  ;;  %v383_v24 = vadd.f32 %v1050_v28, %v382_v38  ;;  %v156_v28 = vsel %vm60_vm1, %v59_v10, %v57_v4 }
 0x498   :  { %v233_v57 = vsel %vm161_vm3, %v996_v36, %v156_v28  ;;  %v616_v61 = vmul.f32 %v1170_v56, %v614_v58 }
 0x499   :  { %v385_v46 = vmul.f32 %v797_v53, %v383_v24  ;;  %v849_v53 = vld [vmem:[%s1258_s2 + $0x7] ss:$0 sm:$0xff]  ;;  %v310_v63 = vsel %vm238_vm5, %v1021_v59, %v233_v57 }
 0x49a   :  { %vm625_vm2 = vcmp.eq.s32.totalorder %v849_v53, %v968_v3  ;;  %v387_v0 = vsel %vm315_vm7, %v1041_v20, %v310_v63  ;;  %v824_v59 = vld [vmem:[%s1258_s2 + $0x7] sm:$0x1] }
 0x49b   :  { %v386_v48 = vadd.f32 %v385_v46, %v309_v41  ;;  %v825_v62 = vsel %vm625_vm2, 1.0, %v916_v33  ;;  %v464_v9 = vsel %vm392_vm9, %v1061_v45, %v387_v0  ;;  %vm623_vm3 = vcmp.ge.s32.totalorder %v824_v59, 0 }
 0x49c   :  { %v693_v1 = vmul.f32 %v825_v62, %v691_v47  ;;  %v541_v33 = vsel %vm469_vm11, %v1081_v7, %v464_v9  ;;  %v666_v12 = vsel %vm623_vm3, 1, %v914_v6 }
 0x49d   :  { %v463_v40 = vadd.f32 %v462_v51, %v386_v48  ;;  %v618_v56 = vsel %vm546_vm8, %v1151_v49, %v541_v33  ;;  %v667_v14 = vperm.slane %v666_v12, 0 }
 0x49e   :  { %v695_v20 = vsel %vm623_vm3, %v824_v59, %v618_v56 }
 0x49f   :  { %v540_v52 = vadd.f32 %v539_v54, %v463_v40  ;;  %700 = vst [vmem:[#allocation5] sm:$0x1] %v695_v20  ;;  %vm668_vm5 = vcmp.eq.s32.totalorder %v667_v14, 1 }
 0x4a1   :  { %v617_v36 = vadd.f32 %v616_v61, %v540_v52 }
 0x4a3   :  { %v694_v5 = vadd.f32 %v693_v1, %v617_v36 }
 0x4a5   :  { %697 = vst [vmem:[#allocation3] sm:$0x1f] %v694_v5 }
 0x51a   :  { %v658_v11 = vpop.f32.mrf.mxu2 }
 0x51b   :  { %878 = vlog2.f32 %v658_v11 }
 0x521   :  { %v879_v45 = vpop.eup %878 }
 0x522   :  { %v662_v13 = vmul.f32 0.6931472, %v879_v45 }
 0x524   :  { %v663_v7 = vadd.f32 %v662_v13, %v1191_v17 }
 0x526   :  { %v664_v16 = vadd.f32 %v663_v7, %v1005_v43 }
 0x528   :  { %v665_v19 = vadd.f32 %v823_v15, %v664_v16 }
 0x52a   :  { %v669_v21 = vsel %vm668_vm5, %v665_v19, %v1187_v8 }
 0x52b   :  { %696 = vst [vmem:[#allocation2] sm:$0x1f] %v669_v21 }
 0x52c PF:  { %v704_v49 = vld [vmem:[%s1263_s7] sm:$0x1f]  ;;  %v917_v22 = vmov 0   ;;  %vm712_vm7 = vcmask 1044480   ;;  %s918_s7 = smov [#allocation9]   ;;  %s764_s3 = sshll.u32 %s1264_s8, 4  ;;  %s765_s3 = int_to_ptr.hbm [resolvable:$true] %s764_s3 }
 0x52d   :  { %880 = vset.pattern.permute.xlu0 %v917_v22  ;;  %v746_v38 = vld [vmem:[#allocation3] sm:$0x1f]  ;;  %s762_s11 = sshll.u32 %s918_s7, 4  ;;  %s763_s11 = int_to_ptr.vmem [resolvable:$true] %s762_s11 }
 0x52e   :  { %708 = vperm.xlu0 %880, %v704_v49   ;;  %v747_v39 = vsel %vm712_vm7, %v746_v38, 0.0 }
 0x52f   :  { %v881_v26 = vld [vmem:[#allocation5] ss:$0 sm:$0xff]  ;;  %v748_v41 = vrot.slane %v747_v39, 4 }
 0x530   :  { %vm735_vm9 = vcmp.eq.s32.totalorder %v881_v26, %v968_v3 }
 0x531   :  { %v831_v31 = vsel %vm735_vm9, 1.0, %v912_v2  ;;  %v749_v44 = vadd.f32 %v748_v41, %v747_v39 }
 0x532   :  { %v705_v6 = vld [vmem:[#allocation2] sm:$0x1f] }
 0x533   :  { %v750_v4 = vrot.slane %v749_v44, 2 }
 0x535   :  { %v751_v28 = vadd.f32 %v750_v4, %v749_v44 }
 0x537   :  { %v752_v57 = vrot.slane %v751_v28, 1 }
 0x539   :  { %v753_v58 = vadd.f32 %v752_v57, %v751_v28 }
 0x5a0   :  { %v709_v18 = vpop.permute.xlu0 %708 }
 0x5a1   :  { %v711_v23 = vadd.f32 %v709_v18, %v705_v6  ;;  %v738_v37 = vmul.f32 %v831_v31, %v709_v18 }
 0x5a3   :  { %v713_v17 = vsel %vm712_vm7, %v711_v23, -inf  ;;  %v739_v24 = vsel %vm712_vm7, %v738_v37, 0.0 }
 0x5a4   :  { %v714_v43 = vrot.slane %v713_v17, 4  ;;  %v740_v46 = vrot.slane %v739_v24, 4 }
 0x5a6   :  { %v715_v25 = vmax.f32 %v713_v17, %v714_v43  ;;  %v741_v3 = vadd.f32 %v740_v46, %v739_v24 }
 0x5a8   :  { %v716_v27 = vrot.slane %v715_v25, 2  ;;  %v742_v2 = vrot.slane %v741_v3, 2 }
 0x5aa   :  { %v717_v8 = vmax.f32 %v715_v25, %v716_v27  ;;  %v743_v54 = vadd.f32 %v742_v2, %v741_v3 }
 0x5ac   :  { %v718_v29 = vrot.slane %v717_v8, 1  ;;  %v744_v53 = vrot.slane %v743_v54, 1 }
 0x5ae   :  { %v719_v30 = vmax.f32 %v717_v8, %v718_v29  ;;  %v745_v52 = vadd.f32 %v744_v53, %v743_v54 }
 0x5b0   :  { %v720_v32 = vsub.f32 %v711_v23, %v719_v30  ;;  %v754_v61 = vadd.f32 %v753_v58, %v745_v52 }
 0x5b2   :  { %v721_v35 = vmul.f32 1.442695, %v720_v32 }
 0x5b4   :  { %882 = vpow2.f32 %v721_v35 }
 0x5ba   :  { %v883_v10 = vpop.eup %882 }
 0x5bb   :  { %v723_v34 = vsel %vm712_vm7, %v883_v10, 0.0 }
 0x5bc   :  { %v724_v48 = vrot.slane %v723_v34, 4 }
 0x5be   :  { %v725_v42 = vadd.f32 %v724_v48, %v723_v34 }
 0x5c0   :  { %v726_v50 = vrot.slane %v725_v42, 2 }
 0x5c2   :  { %v727_v51 = vadd.f32 %v726_v50, %v725_v42 }
 0x5c4   :  { %v728_v40 = vrot.slane %v727_v51, 1 }
 0x5c6   :  { %v729_v55 = vadd.f32 %v728_v40, %v727_v51 }
 0x5c8   :  { %884 = vlog2.f32 %v729_v55 }
 0x5ce   :  { %v885_v15 = vpop.eup %884 }
 0x5cf   :  { %v731_v60 = vmul.f32 0.6931472, %v885_v15 }
 0x5d1   :  { %v732_v47 = vadd.f32 %v731_v60, %v719_v30 }
 0x5d3   :  { %v755_v62 = vsub.f32 %v754_v61, %v732_v47 }
 0x5d5   :  { %756 = vst [vmem:[#allocation9] sm:$0x1] %v755_v62 }
 0x5d6   :  { %767 = dma.vmem_to_hbm [thread:$0]  %s763_s11, 16, %s765_s3, [#allocation10]  }
 0x5d7   :  { %910 = dma.done.wait [#allocation10], 16  }
 0x5d8   :  { %911 = vsyncadd [#allocation10], 4294967280 }
 0x5d9   :  { %772 = vsyncpa [#allocation10], 1 }

</bundles_post_ra>
